<compile_context>
chip_gen: v7x
topology: tpu7x:2x2x1
jax: 0.10.0
libtpu: 0.0.40
codegen_flags: <defaults>
</compile_context>

<pallas_src>
import jax
import jax.numpy as jnp
import numpy as np
from jax.experimental import pallas as pl
from jax.experimental.pallas import tpu as pltpu


# MXU operand dtype for the gather matmul.  bf16 is native on v5e/v6e/v7x MXUs
# and cuts pass count ~3x; set to jnp.float32 for an exact (slower) path.
MXU_DTYPE = jnp.bfloat16


# ----------------------------------------------------------------------------
# glue: combined normalized-coords homography  T = M_inv @ inv(H) @ M
# (M hard-codes H=240, W=320 exactly like the PyTorch __init__)
# ----------------------------------------------------------------------------
def _combined_transform(Hm):
    H_img, W_img = 240.0, 320.0
    M = jnp.array(
        [[W_img / 2.0, 0.0, W_img / 2.0],
         [0.0, H_img / 2.0, H_img / 2.0],
         [0.0, 0.0, 1.0]], dtype=jnp.float32)
    M_inv = jnp.linalg.inv(M)
    # TODO(synk): 3x3 batched inverse kept in plain JAX (tiny, not a hot path).
    H_inv = jnp.linalg.inv(Hm.astype(jnp.float32))
    return jnp.einsum("ij,bjk,kl->bil", M_inv, H_inv, M).astype(jnp.float32)


def _vmem_capacity_bytes():
    try:
        return int(pltpu.get_tpu_info().vmem_capacity_bytes)
    except Exception:
        return 64 << 20          # conservative fallback: v7x-class 64 MiB


def _pick_tile_n(N, vmem_bytes):
    # v5e/v6e (128 MiB VMEM): push toward 2048 lanes to amortize per-step
    # overhead; v7x (64 MiB): cap at 1024 so the (C*Win, tile_n) f32 temps
    # stay well under the scoped limit.
    cap = 2048 if vmem_bytes >= (96 << 20) else 1024
    t = (min(cap, N) // 128) * 128
    while t >= 128:
        if N % t == 0:
            return t
        t -= 128
    return N  # toy/odd sizes: correct, but stores are lane-masked


# ----------------------------------------------------------------------------
# Pallas kernel: one (batch, output-pixel-tile) pair per grid step.
#
#   out[c, k] = sum_x B[x, k] * ( sum_y xT[c*Win + x, y] * A[y, k] )
#
#   A (Hin, tile_n): one-hot row weights   -> MXU matmul (K = Hin)
#   B (Win, tile_n): one-hot column weights -> elementwise combine + reduce
# ----------------------------------------------------------------------------
def make_stn_kernel(C, Hin, Win, tile_n, mxu_dtype):
    def kernel(pk_ref, x_ref, o_ref):
        # pk_ref: (1, 8, tile_n) VMEM f32 — precomputed per-pixel sampling data
        #   rows: [y0c, y1c, x0c, x1c, wy0*vy0, wy1*vy1, wx0*vx0, wx1*vx1]
        # x_ref:  (1, C*Win, Hin) VMEM mxu_dtype — transposed image (resident)
        # o_ref:  (1, C, tile_n)  VMEM — output tile
        pk = pk_ref[0]                                      # (8, tile_n)
        y0c = pk[0:1, :].astype(jnp.int32)
        y1c = pk[1:2, :].astype(jnp.int32)
        x0c = pk[2:3, :].astype(jnp.int32)
        x1c = pk[3:4, :].astype(jnp.int32)
        wy0 = pk[4:5, :]
        wy1 = pk[5:6, :]
        wx0 = pk[6:7, :]
        wx1 = pk[7:8, :]

        # Row (y) one-hot weights — MXU contracting operand, K = Hin.
        # (y0c == y1c only when one side is clipped, and then its weight is 0.)
        rh = jax.lax.broadcasted_iota(jnp.int32, (Hin, tile_n), 0)
        A = (jnp.where(rh == y0c, wy0, 0.0)
             + jnp.where(rh == y1c, wy1, 0.0)).astype(mxu_dtype)   # (Hin, tile_n)

        # Row gather on the MXU: (C*Win, Hin) @ (Hin, tile_n), f32 accumulate.
        trow = jnp.dot(x_ref[0], A, preferred_element_type=jnp.float32)

        # Column (x) one-hot weights — stays f32, combined on the VPU.
        rw = jax.lax.broadcasted_iota(jnp.int32, (Win, tile_n), 0)
        Bc = (jnp.where(rw == x0c, wx0, 0.0)
              + jnp.where(rw == x1c, wx1, 0.0))                    # (Win, tile_n)

        # Per-channel elementwise combine + cross-sublane reduce (replaces the
        # old tiny-M 0/1 "Sel" matmul).
        chans = []
        for c in range(C):
            blk = trow[c * Win:(c + 1) * Win, :]                   # (Win, tile_n)
            chans.append(jnp.sum(blk * Bc, axis=0, keepdims=True))  # (1, tile_n)
        out = jnp.concatenate(chans, axis=0)                        # (C, tile_n)
        o_ref[0] = out.astype(o_ref.dtype)

    return kernel


# ----------------------------------------------------------------------------
# wrapper
# ----------------------------------------------------------------------------
@jax.jit
def stn_pallas(x, Hm):
    B, C, Hin, Win = x.shape
    N = Hin * Win
    eps = 1e-8

    vmem_bytes = _vmem_capacity_bytes()
    tile_n = _pick_tile_n(N, vmem_bytes)
    n_tiles = N // tile_n

    T = _combined_transform(Hm)                                   # (B, 3, 3)

    # --- per-pixel sampling precompute, hoisted to XLA (the (1, tile_n)
    # coordinate math previously ran at 1/8 sublane utilization in-kernel) ---
    jn = (2.0 * jnp.arange(Win, dtype=jnp.float32) + 1.0) / Win - 1.0
    im = (2.0 * jnp.arange(Hin, dtype=jnp.float32) + 1.0) / Hin - 1.0
    xn, yn = jnp.meshgrid(jn, im)                                 # (Hin, Win)
    pts = jnp.stack([xn.reshape(-1), yn.reshape(-1),
                     jnp.ones((N,), jnp.float32)], axis=0)        # (3, N)
    tp = jnp.einsum("bij,jn->bin", T, pts)                        # (B, 3, N)
    rz = 1.0 / (tp[:, 2, :] + eps)                                # perspective divide
    gx = tp[:, 0, :] * rz
    gy = tp[:, 1, :] * rz
    ix = ((gx + 1.0) * Win - 1.0) * 0.5                           # align_corners=False
    iy = ((gy + 1.0) * Hin - 1.0) * 0.5
    x0f = jnp.floor(ix)
    y0f = jnp.floor(iy)
    wx1 = ix - x0f; wx0 = 1.0 - wx1
    wy1 = iy - y0f; wy0 = 1.0 - wy1
    x0 = x0f.astype(jnp.int32); x1 = x0 + 1
    y0 = y0f.astype(jnp.int32); y1 = y0 + 1

    def valid(idx, size):
        return ((idx >= 0) & (idx < size)).astype(jnp.float32)

    packed = jnp.stack([
        jnp.clip(y0, 0, Hin - 1).astype(jnp.float32),
        jnp.clip(y1, 0, Hin - 1).astype(jnp.float32),
        jnp.clip(x0, 0, Win - 1).astype(jnp.float32),
        jnp.clip(x1, 0, Win - 1).astype(jnp.float32),
        wy0 * valid(y0, Hin), wy1 * valid(y1, Hin),
        wx0 * valid(x0, Win), wx1 * valid(x1, Win),
    ], axis=1)                                                    # (B, 8, N) f32

    # Transposed image so the MXU contracting (K) axis is Hin (240 in the
    # nominal module: pads to 256 instead of 512 on v6e/v7x), cast once to the
    # MXU dtype (also halves the per-batch image DMA when bf16).
    x2 = jnp.swapaxes(x, 2, 3).reshape(B, C * Win, Hin).astype(MXU_DTYPE)

    kernel = make_stn_kernel(C, Hin, Win, tile_n, MXU_DTYPE)
    cost = pl.CostEstimate(
        flops=2 * B * C * Hin * Win * N,
        transcendentals=0,
        bytes_accessed=int(B * C * Win * Hin * x2.dtype.itemsize
                           + B * 8 * N * 4
                           + B * C * N * x.dtype.itemsize))

    out_flat = pl.pallas_call(
        kernel,
        out_shape=jax.ShapeDtypeStruct((B, C, N), x.dtype),
        grid=(B, n_tiles),
        in_specs=[
            pl.BlockSpec((1, 8, tile_n), lambda b, n: (b, 0, n)),
            pl.BlockSpec((1, C * Win, Hin), lambda b, n: (b, 0, 0)),  # resident over n
        ],
        out_specs=pl.BlockSpec((1, C, tile_n), lambda b, n: (b, 0, n)),
        compiler_params=pltpu.CompilerParams(
            dimension_semantics=("parallel", "parallel"),
            vmem_limit_bytes=int(min(3 * vmem_bytes // 4, 96 << 20))),
        cost_estimate=cost,
    )(packed, x2)
    return out_flat.reshape(B, C, Hin, Win)


# ----------------------------------------------------------------------------
# pure-JAX f32 reference (same math) for a correctness check
# ----------------------------------------------------------------------------
def stn_reference(x, Hm):
    B, C, Hin, Win = x.shape
    eps = 1e-8
    T = _combined_transform(Hm)

    jj = (2.0 * jnp.arange(Win, dtype=jnp.float32) + 1.0) / Win - 1.0
    ii = (2.0 * jnp.arange(Hin, dtype=jnp.float32) + 1.0) / Hin - 1.0
    xn, yn = jnp.meshgrid(jj, ii)                       # (Hin, Win)
    pts = jnp.stack([xn, yn, jnp.ones_like(xn)], -1).reshape(-1, 3)  # (N, 3)

    tp = jnp.einsum("bij,nj->bni", T, pts)              # (B, N, 3)
    gx = tp[..., 0] / (tp[..., 2] + eps)
    gy = tp[..., 1] / (tp[..., 2] + eps)
    ix = ((gx + 1.0) * Win - 1.0) * 0.5
    iy = ((gy + 1.0) * Hin - 1.0) * 0.5

    x0 = jnp.floor(ix); y0 = jnp.floor(iy)
    wx1 = ix - x0; wx0 = 1.0 - wx1
    wy1 = iy - y0; wy0 = 1.0 - wy1
    x0i = x0.astype(jnp.int32); x1i = x0i + 1
    y0i = y0.astype(jnp.int32); y1i = y0i + 1

    bidx = jnp.arange(B)[:, None, None]
    cidx = jnp.arange(C)[None, :, None]

    def sample(yy, xx, wgt):
        vy = (yy >= 0) & (yy < Hin)
        vx = (xx >= 0) & (xx < Win)
        yc = jnp.clip(yy, 0, Hin - 1)
        xc = jnp.clip(xx, 0, Win - 1)
        vals = x[bidx, cidx, yc[:, None, :], xc[:, None, :]]     # (B, C, N)
        w = (wgt * vy.astype(x.dtype) * vx.astype(x.dtype))[:, None, :]
        return vals * w

    out = (sample(y0i, x0i, wy0 * wx0) + sample(y0i, x1i, wy0 * wx1)
           + sample(y1i, x0i, wy1 * wx0) + sample(y1i, x1i, wy1 * wx1))
    return out.reshape(B, C, Hin, Win)


# ----------------------------------------------------------------------------
if __name__ == "__main__":
    key = jax.random.PRNGKey(0)
    B, C, Hin, Win = 2, 4, 16, 16

    kx, k1, k2, k3 = jax.random.split(key, 4)
    x = jax.random.normal(kx, (B, C, Hin, Win), jnp.float32)

    # Deterministic, well-conditioned homographies (pixel-space, ~identity):
    A = jnp.eye(2, dtype=jnp.float32)[None] + 0.1 * jax.random.normal(k1, (B, 2, 2), jnp.float32)
    t = 10.0 * jax.random.normal(k2, (B, 2, 1), jnp.float32)
    p = 1e-4 * jax.random.normal(k3, (B, 1, 2), jnp.float32)
    top = jnp.concatenate([A, t], axis=-1)                                   # (B, 2, 3)
    bot = jnp.concatenate([p, jnp.ones((B, 1, 1), jnp.float32)], axis=-1)    # (B, 1, 3)
    Hm = jnp.concatenate([top, bot], axis=1)                                 # (B, 3, 3)

    out = stn_pallas(x, Hm)
    out = jax.block_until_ready(out)

    ref = stn_reference(x, Hm)
    assert out.shape == (B, C, Hin, Win)
    # Tolerance sized for the bf16 MXU operands (~2^-7 relative); the f32 path
    # (MXU_DTYPE = jnp.float32) matches the reference to 5e-3.
    if MXU_DTYPE == jnp.bfloat16:
        atol, rtol = 2e-2, 1e-2
    else:
        atol, rtol = 5e-3, 5e-3
    np.testing.assert_allclose(np.asarray(out), np.asarray(ref), atol=atol, rtol=rtol)

    print("KERNEL_OK")
</pallas_src>

<mosaic_0001>
module attributes {stable_mosaic.version = 11 : i64} {
  func.func @kernel(%arg0: i32, %arg1: i32, %arg2: memref<1x8x256xf32, #tpu.memory_space<vmem>>, %arg3: memref<1x64x16xbf16, #tpu.memory_space<vmem>>, %arg4: memref<1x4x256xf32, #tpu.memory_space<vmem>>) attributes {dimension_semantics = [#tpu.dimension_semantics<parallel>, #tpu.dimension_semantics<parallel>], iteration_bounds = array<i64: 2, 1>, scalar_prefetch = 0 : i64, scratch_operands = 0 : i64, tpu.core_type = #tpu.core_type<tc>, window_params = [{transform_indices = @transform_0, window_bounds = array<i64: 1, 8, 256>}, {transform_indices = @transform_1, window_bounds = array<i64: 1, 64, 16>}, {transform_indices = @transform_2, window_bounds = array<i64: 1, 4, 256>}]} {
    %c0 = arith.constant 0 : index
    %c0_0 = arith.constant 0 : index
    %c0_1 = arith.constant 0 : index
    %0 = vector.load %arg2[%c0, %c0_0, %c0_1] : memref<1x8x256xf32, #tpu.memory_space<vmem>>, vector<1x8x256xf32>
    %1 = vector.shape_cast %0 : vector<1x8x256xf32> to vector<8x256xf32>
    %2 = vector.extract_strided_slice %1 {offsets = [0, 0], sizes = [1, 256], strides = [1, 1]} : vector<8x256xf32> to vector<1x256xf32>
    %3 = arith.fptosi %2 : vector<1x256xf32> to vector<1x256xi32>
    %4 = vector.extract_strided_slice %1 {offsets = [1, 0], sizes = [1, 256], strides = [1, 1]} : vector<8x256xf32> to vector<1x256xf32>
    %5 = arith.fptosi %4 : vector<1x256xf32> to vector<1x256xi32>
    %6 = vector.extract_strided_slice %1 {offsets = [2, 0], sizes = [1, 256], strides = [1, 1]} : vector<8x256xf32> to vector<1x256xf32>
    %7 = arith.fptosi %6 : vector<1x256xf32> to vector<1x256xi32>
    %8 = vector.extract_strided_slice %1 {offsets = [3, 0], sizes = [1, 256], strides = [1, 1]} : vector<8x256xf32> to vector<1x256xf32>
    %9 = arith.fptosi %8 : vector<1x256xf32> to vector<1x256xi32>
    %10 = vector.extract_strided_slice %1 {offsets = [4, 0], sizes = [1, 256], strides = [1, 1]} : vector<8x256xf32> to vector<1x256xf32>
    %11 = vector.extract_strided_slice %1 {offsets = [5, 0], sizes = [1, 256], strides = [1, 1]} : vector<8x256xf32> to vector<1x256xf32>
    %12 = vector.extract_strided_slice %1 {offsets = [6, 0], sizes = [1, 256], strides = [1, 1]} : vector<8x256xf32> to vector<1x256xf32>
    %13 = vector.extract_strided_slice %1 {offsets = [7, 0], sizes = [1, 256], strides = [1, 1]} : vector<8x256xf32> to vector<1x256xf32>
    %14 = tpu.iota {dimensions = array<i32: 0>} : vector<16x256xi32>
    %15 = vector.broadcast %3 : vector<1x256xi32> to vector<16x256xi32>
    %16 = arith.cmpi eq, %14, %15 : vector<16x256xi32>
    %cst = arith.constant 0.000000e+00 : f32
    %17 = vector.shape_cast %10 : vector<1x256xf32> to vector<1x256xf32>
    %18 = vector.broadcast %17 : vector<1x256xf32> to vector<16x256xf32>
    %19 = vector.broadcast %cst : f32 to vector<16x256xf32>
    %20 = arith.select %16, %18, %19 : vector<16x256xi1>, vector<16x256xf32>
    %21 = vector.broadcast %5 : vector<1x256xi32> to vector<16x256xi32>
    %22 = arith.cmpi eq, %14, %21 : vector<16x256xi32>
    %cst_2 = arith.constant 0.000000e+00 : f32
    %23 = vector.shape_cast %11 : vector<1x256xf32> to vector<1x256xf32>
    %24 = vector.broadcast %23 : vector<1x256xf32> to vector<16x256xf32>
    %25 = vector.broadcast %cst_2 : f32 to vector<16x256xf32>
    %26 = arith.select %22, %24, %25 : vector<16x256xi1>, vector<16x256xf32>
    %27 = arith.addf %20, %26 : vector<16x256xf32>
    %28 = arith.truncf %27 : vector<16x256xf32> to vector<16x256xbf16>
    %c0_3 = arith.constant 0 : index
    %c0_4 = arith.constant 0 : index
    %c0_5 = arith.constant 0 : index
    %29 = vector.load %arg3[%c0_3, %c0_4, %c0_5] : memref<1x64x16xbf16, #tpu.memory_space<vmem>>, vector<1x64x16xbf16>
    %30 = vector.shape_cast %29 : vector<1x64x16xbf16> to vector<64x16xbf16>
    %cst_6 = arith.constant dense<0.000000e+00> : vector<64x256xf32>
    %31 = tpu.matmul %30, %28, %cst_6 {dimension_numbers = #tpu.dot_dimension_numbers<[1], [0], [0], [1], [0, 0, 1, 1], [], []>} : vector<64x16xbf16>, vector<16x256xbf16>, vector<64x256xf32> -> vector<64x256xf32>
    %32 = tpu.iota {dimensions = array<i32: 0>} : vector<16x256xi32>
    %33 = vector.broadcast %7 : vector<1x256xi32> to vector<16x256xi32>
    %34 = arith.cmpi eq, %32, %33 : vector<16x256xi32>
    %cst_7 = arith.constant 0.000000e+00 : f32
    %35 = vector.shape_cast %12 : vector<1x256xf32> to vector<1x256xf32>
    %36 = vector.broadcast %35 : vector<1x256xf32> to vector<16x256xf32>
    %37 = vector.broadcast %cst_7 : f32 to vector<16x256xf32>
    %38 = arith.select %34, %36, %37 : vector<16x256xi1>, vector<16x256xf32>
    %39 = vector.broadcast %9 : vector<1x256xi32> to vector<16x256xi32>
    %40 = arith.cmpi eq, %32, %39 : vector<16x256xi32>
    %cst_8 = arith.constant 0.000000e+00 : f32
    %41 = vector.shape_cast %13 : vector<1x256xf32> to vector<1x256xf32>
    %42 = vector.broadcast %41 : vector<1x256xf32> to vector<16x256xf32>
    %43 = vector.broadcast %cst_8 : f32 to vector<16x256xf32>
    %44 = arith.select %40, %42, %43 : vector<16x256xi1>, vector<16x256xf32>
    %45 = arith.addf %38, %44 : vector<16x256xf32>
    %46 = vector.extract_strided_slice %31 {offsets = [0, 0], sizes = [16, 256], strides = [1, 1]} : vector<64x256xf32> to vector<16x256xf32>
    %47 = arith.mulf %46, %45 : vector<16x256xf32>
    %cst_9 = arith.constant dense<0.000000e+00> : vector<256xf32>
    %48 = vector.multi_reduction <add>, %47, %cst_9 [0] : vector<16x256xf32> to vector<256xf32>
    %49 = vector.shape_cast %48 : vector<256xf32> to vector<1x256xf32>
    %50 = vector.extract_strided_slice %31 {offsets = [16, 0], sizes = [16, 256], strides = [1, 1]} : vector<64x256xf32> to vector<16x256xf32>
    %51 = arith.mulf %50, %45 : vector<16x256xf32>
    %cst_10 = arith.constant dense<0.000000e+00> : vector<256xf32>
    %52 = vector.multi_reduction <add>, %51, %cst_10 [0] : vector<16x256xf32> to vector<256xf32>
    %53 = vector.shape_cast %52 : vector<256xf32> to vector<1x256xf32>
    %54 = vector.extract_strided_slice %31 {offsets = [32, 0], sizes = [16, 256], strides = [1, 1]} : vector<64x256xf32> to vector<16x256xf32>
    %55 = arith.mulf %54, %45 : vector<16x256xf32>
    %cst_11 = arith.constant dense<0.000000e+00> : vector<256xf32>
    %56 = vector.multi_reduction <add>, %55, %cst_11 [0] : vector<16x256xf32> to vector<256xf32>
    %57 = vector.shape_cast %56 : vector<256xf32> to vector<1x256xf32>
    %58 = vector.extract_strided_slice %31 {offsets = [48, 0], sizes = [16, 256], strides = [1, 1]} : vector<64x256xf32> to vector<16x256xf32>
    %59 = arith.mulf %58, %45 : vector<16x256xf32>
    %cst_12 = arith.constant dense<0.000000e+00> : vector<256xf32>
    %60 = vector.multi_reduction <add>, %59, %cst_12 [0] : vector<16x256xf32> to vector<256xf32>
    %61 = vector.shape_cast %60 : vector<256xf32> to vector<1x256xf32>
    %62 = tpu.concatenate %49, %53, %57, %61 in 0 : vector<1x256xf32>, vector<1x256xf32>, vector<1x256xf32>, vector<1x256xf32> -> vector<4x256xf32>
    %c0_13 = arith.constant 0 : index
    %c0_14 = arith.constant 0 : index
    %c0_15 = arith.constant 0 : index
    %63 = vector.load %arg4[%c0_13, %c0_14, %c0_15] : memref<1x4x256xf32, #tpu.memory_space<vmem>>, vector<1x4x256xf32>
    %64 = vector.shape_cast %63 : vector<1x4x256xf32> to vector<4x256xf32>
    %65 = vector.shape_cast %62 : vector<4x256xf32> to vector<1x4x256xf32>
    tpu.vector_store %arg4[%c0_13, %c0_14, %c0_15], %65 {strides = array<i32>} : memref<1x4x256xf32, #tpu.memory_space<vmem>>, vector<1x4x256xf32>,
    return
  }
  func.func @transform_0(%arg0: i32, %arg1: i32) -> (i32, i32, i32) {
    %c0_i32 = arith.constant 0 : i32
    %c0_i32_0 = arith.constant 0 : i32
    return %arg0, %c0_i32, %arg1 : i32, i32, i32
  }
  func.func @transform_1(%arg0: i32, %arg1: i32) -> (i32, i32, i32) {
    %c0_i32 = arith.constant 0 : i32
    %c0_i32_0 = arith.constant 0 : i32
    %c0_i32_1 = arith.constant 0 : i32
    return %arg0, %c0_i32, %c0_i32_0 : i32, i32, i32
  }
  func.func @transform_2(%arg0: i32, %arg1: i32) -> (i32, i32, i32) {
    %c0_i32 = arith.constant 0 : i32
    %c0_i32_0 = arith.constant 0 : i32
    return %arg0, %c0_i32, %arg1 : i32, i32, i32
  }
}

</mosaic_0001>

<bundles_post_ra>
// kernel: custom-call.25
= control target key start
LH: loop header
LB: loop body
LE: loop exit
PB: predicated region body
PF: predicated region fallthrough
CT: control target
= control target key end

     0   :  { %5 = vsyncpa [#allocation6], 0  ;;  %v75_v1 = vlaneseq  ;;  %v526_v2 = vmov 0   ;;  %s555_s14 = smov 0   ;;  %s605_s0 = inlined_call_operand.vmem [shape: f32[3,3], index: 0, kind: input, shape index: {}]   ;;  %s606_s1 = inlined_call_operand.vmem [shape: f32[3,3], index: 1, kind: output, shape index: {0}]   ;;  %s607_s2 = inlined_call_operand.hbm [shape: s32[3], index: 2, kind: output, shape index: {1}]   ;;  %s608_s3 = inlined_call_operand.vmem [shape: s32[3], index: 3, kind: output, shape index: {2}]  }
   0x1   :  { %v66_v0 = vld [vmem:[%s605_s0] sm:$0xf]  ;;  %74 = vst [vmem:[#allocation4] sm:$0x1] %v526_v2 }
   0x2   :  { %67 = vst [vmem:[#allocation1] sm:$0xf] %v66_v0  ;;  %v552_v3 = vshrl.u32 %v75_v1, 7 }
   0x4   :  { %79 = vst [vmem:[#allocation9] sm:$0xff] %v552_v3 }
   0x9   :  { %v70_v4 = vld [vmem:[#allocation1] sm:$0xf] }
   0xa   :  { %71 = vst [vmem:[#allocation0] sm:$0xf] %v70_v4 }
  0x11   :  { %v72_v5 = vld [vmem:[#allocation0] sm:$0xff] }
  0x12   :  { %73 = vst [vmem:[#allocation2] sm:$0xff] %v72_v5 }
  0x13 LB: > { %vm95_vm0 = vcmp.lt.s32.totalorder %v552_v3, 3  ;;  %v562_v8 = vstv %s524_s14  ;;  %s136_s0 = ssub.s32 128, %s524_s14  ;;  %v142_v38 = vand.u32 127, %v75_v1  ;;  %v145_v40 = vld [vmem:[#allocation4] ss:$0 sm:$0xff]  ;;  %s148_s15 = scalar_lea.vmem [#allocation2], %s524_s14  ;;  %s524_s14 = sphi %s555_s14, %s85_s14  }
  0x14   : > { %vm94_vm1 = vcmp.ge.s32.totalorder %v552_v3, %v562_v8  ;;  %s154_s17 = scalar_lea.vmem [#allocation9], %s524_s14  ;;  %vm174_vm15 = vcmp.gt.s32.totalorder %v552_v3, %v562_v8  ;;  %s85_s14 = sadd.s32 1, %s524_s14  }
  0x15   : > { %vm96_vm3 = vmand %vm94_vm1, %vm95_vm0  ;;  %vm166_vm12 = vcmp.gt.s32.totalorder %v142_v38, %v562_v8  ;;  %vm143_vm13 = vcmp.eq.s32.totalorder %v142_v38, %v562_v8  ;;  %v156_v42 = vld [vmem:[%s154_s17] ss:$0 sm:$0xff]  ;;  %p82_p0 = scmp.ge.s32.totalorder %s85_s14, 3  }
  0x16   : > { %vm178_vm1 = vmand %vm174_vm15, %vm143_vm13  ;;  %s527_s20 = smov (%p82_p0), [#allocation5]  }
  0x17   :  { %s319_s21 = sshll.u32 (%p82_p0), %s527_s20, 4  ;;  %s320_s21 = int_to_ptr.vmem [resolvable:$true] %s319_s21 }
  0x18   :  { %s494_s24 = scalar_lea.vmem (%p82_p0), %s320_s21, 16  ;;  %s498_s25 = scalar_lea.vmem (%p82_p0), %s320_s21, 32 }
  0x19   : > { %v90_v6 = vld [vmem:[#allocation2] sm:$0xff]  ;;  %v150_v41 = vld [vmem:[%s148_s15] ss:$0 sm:$0xff]  ;;  %p495_p1 = scmp.ne.s32.totalorder (%p82_p0), %s320_s21, %s494_s24  ;;  %p499_p2 = scmp.lt.s32.totalorder (%p82_p0), %s320_s21, %s320_s21 }
  0x1a   : > { %v91_v7 = vand.u32 2147483647, %v90_v6  ;;  %p500_p3 = scmp.lt.s32.totalorder (%p82_p0), %s498_s25, %s494_s24 }
  0x1c   : > { %vm473_vm2 = vcmp.gt.f32.partialorder %v91_v7, -inf  ;;  %p501_p4 = por (%p82_p0), %p500_p3, %p499_p2 }
  0x1d   : > { %vm98_vm4 = vmand %vm96_vm3, %vm473_vm2 }
  0x1e   : > { %v99_v9 = vsel %vm98_vm4, %v552_v3, %v562_v8  ;;  %v100_v10 = vsel %vm98_vm4, %v91_v7, -inf  ;;  %p502_p5 = pnand (%p82_p0), %p501_p4, %p495_p1 }
  0x1f   : > { %v101_v11 = vrot.slane %v100_v10, 1  ;;  %v102_v12 = vrot.slane %v99_v9, 1 }
  0x21   : > { %vm103_vm5 = vcmp.ge.f32.partialorder %v101_v11, %v100_v10  ;;  %v106_v13 = vrot.slane %v101_v11, 1  ;;  %v107_v14 = vrot.slane %v102_v12, 1 }
  0x22   : > { %v104_v15 = vsel %vm103_vm5, %v101_v11, %v100_v10  ;;  %v105_v16 = vsel %vm103_vm5, %v102_v12, %v99_v9 }
  0x23   : > { %vm108_vm6 = vcmp.ge.f32.partialorder %v106_v13, %v104_v15  ;;  %v111_v17 = vrot.slane %v106_v13, 1  ;;  %v112_v18 = vrot.slane %v107_v14, 1 }
  0x24   : > { %v109_v19 = vsel %vm108_vm6, %v106_v13, %v104_v15  ;;  %v110_v20 = vsel %vm108_vm6, %v107_v14, %v105_v16 }
  0x25   : > { %vm113_vm7 = vcmp.ge.f32.partialorder %v111_v17, %v109_v19  ;;  %v116_v21 = vrot.slane %v111_v17, 1  ;;  %v117_v22 = vrot.slane %v112_v18, 1 }
  0x26   : > { %v114_v23 = vsel %vm113_vm7, %v111_v17, %v109_v19  ;;  %v115_v24 = vsel %vm113_vm7, %v112_v18, %v110_v20 }
  0x27   : > { %vm118_vm8 = vcmp.ge.f32.partialorder %v116_v21, %v114_v23  ;;  %v121_v25 = vrot.slane %v116_v21, 1  ;;  %v122_v26 = vrot.slane %v117_v22, 1 }
  0x28   : > { %v119_v27 = vsel %vm118_vm8, %v116_v21, %v114_v23  ;;  %v120_v28 = vsel %vm118_vm8, %v117_v22, %v115_v24 }
  0x29   : > { %vm123_vm9 = vcmp.ge.f32.partialorder %v121_v25, %v119_v27  ;;  %v126_v29 = vrot.slane %v121_v25, 1  ;;  %v127_v30 = vrot.slane %v122_v26, 1 }
  0x2a   : > { %v124_v31 = vsel %vm123_vm9, %v121_v25, %v119_v27  ;;  %v125_v32 = vsel %vm123_vm9, %v122_v26, %v120_v28 }
  0x2b   : > { %vm128_vm10 = vcmp.ge.f32.partialorder %v126_v29, %v124_v31  ;;  %v131_v33 = vrot.slane %v126_v29, 1  ;;  %v132_v34 = vrot.slane %v127_v30, 1 }
  0x2c   : > { %v129_v35 = vsel %vm128_vm10, %v126_v29, %v124_v31  ;;  %v130_v36 = vsel %vm128_vm10, %v127_v30, %v125_v32 }
  0x2d   : > { %vm133_vm11 = vcmp.ge.f32.partialorder %v131_v33, %v129_v35 }
  0x2e   : > { %v135_v37 = vsel %vm133_vm11, %v132_v34, %v130_v36 }
  0x2f   : > { %137 = vrot.lane.b32.xlu0 %v135_v37, %s136_s0 }
  0xa1   : > { %v138_v39 = vpop.permute.xlu0 %137 }
  0xa2   : > { %480 = vpush %v138_v39 }
  0xd3   : > { %s481_s16 = spop %480 }
  0xd4   : > { %v144_v43 = vstv %s481_s16  ;;  %s149_s18 = scalar_lea.vmem [#allocation2], %s481_s16  ;;  %s155_s19 = scalar_lea.vmem [#allocation9], %s481_s16 }
  0xd5   : > { %v151_v44 = vld [vmem:[%s149_s18] ss:$0 sm:$0xff]  ;;  %v146_v46 = vsel %vm143_vm13, %v144_v43, %v145_v40 }
  0xd6   : > { %v157_v45 = vld [vmem:[%s155_s19] ss:$0 sm:$0xff]  ;;  %152 = vst [vmem:[%s149_s18] sm:$0x1] %v150_v41  ;;  %vm160_vm14 = vcmp.ne.f32.partialorder %v151_v44, 0.0  ;;  %147 = vst [vmem:[#allocation4] sm:$0x1] %v146_v46 }
  0xd7   : > { %158 = vst [vmem:[%s155_s19] sm:$0x1] %v156_v42  ;;  %153 = vst [vmem:[%s148_s15] sm:$0x1] %v151_v44  ;;  %v167_v53 = vsel %vm166_vm12, %v151_v44, 0.0 }
  0xd8   : > { %159 = vst [vmem:[%s154_s17] sm:$0x1] %v157_v45  ;;  %vm161_vm0 = vmand %vm143_vm13, %vm160_vm14 }
  0xd9   : > { %v162_v47 = vsel %vm161_vm0, %v151_v44, 1.0 }
  0xda   : > { %v175_v48 = vsel %vm174_vm15, %v162_v47, 1.0 }
  0xdb   : > { %492 = vrcp.f32 %v175_v48 }
  0xdd   :  { %v243_v59 = vld [vmem:[#allocation4] sm:$0x1] (%p82_p0) }
  0xde   : > { %v171_v50 = vld [vmem:[#allocation2] sm:$0xff]  ;;  %245 = vst [vmem:[#allocation5] sm:$0x1] (%p82_p0), %v243_v59 }
  0xdf   :  { %v185_v57 = vld [vmem:[#allocation9] sm:$0xff] (%p82_p0) }
  0xe5   : > { %v493_v49 = vpop.eup %492 }
  0xe6   : > { %v177_v51 = vmul.f32 %v493_v49, %v171_v50 }
  0xe8   : > { %v179_v52 = vsel %vm178_vm1, %v177_v51, 0.0 }
  0xe9   : > { %180 = vadd.xlane.f32.xlu0 %v179_v52 }
 0x116   :  { %201 = vxpose.xlu0.b32.start.end [1/1] (short) (narrow) (%p82_p0), %v185_v57, 8 }
 0x175   :  { %84 = sbr.rel (!%p82_p0) target bundleno = 19 (0x13), region = 163 }
 0x176   : > { %v181_v54 = vpop.xlane.xlu0 %180 }
 0x177   : > { %v182_v55 = vmul.f32 %v181_v54, %v167_v53 }
 0x179   : > { %v183_v56 = vsub.f32 %v177_v51, %v182_v55 }
 0x17b   : > { %184 = vst [vmem:[#allocation2] sm:$0xff] %v183_v56 }
 0x182   :  { %v237_v58 = vld [vmem:[#allocation2] sm:$0xf] }
 0x183   :  { %239 = vst [vmem:[#allocation3] sm:$0xf] %v237_v58 }
 0x18a   :  { %v312_v60 = vld [vmem:[#allocation3] sm:$0xf] }
 0x18b   :  { %313 = vst [vmem:[%s606_s1] sm:$0xf] %v312_v60 }
 0x18c   :  { %505 = shalt.err (!%p502_p5)
}
 0x18d   :  { %s506_s28 = scalar_lea.hbm %s607_s2, 16 }
 0x18e   :  { %p507_p6 = scmp.ne.s32.totalorder %s607_s2, %s506_s28  ;;  %p510_p7 = scmp.lt.u32.totalorder %s506_s28, %s607_s2 }
 0x190   :  { %p512_p8 = pnand %p510_p7, %p507_p6 }
 0x192   :  { %515 = shalt.err (!%p512_p8)
}
 0x193   :  { %322 = dma.vmem_to_hbm [thread:$0]  %s320_s21, 16, %s607_s2, [#allocation6]  }
 0x196   :  { %v217_v61 = vpop.trf.xlu0 }
 0x197   :  { %233 = vst [vmem:[#allocation7] sm:$0x1] %v217_v61 }
 0x19e   :  { %v249_v62 = vld [vmem:[#allocation7] sm:$0x1] }
 0x19f   :  { %251 = vst [vmem:[#allocation8] sm:$0x1] %v249_v62 }
 0x1a6   :  { %v385_v63 = vld [vmem:[#allocation8] sm:$0x1] }
 0x1a7   :  { %386 = vst [vmem:[%s608_s3] sm:$0x1] %v385_v63 }
 0x1a8   :  { %520 = dma.done.wait [#allocation6], 16  }
 0x1a9   :  { %521 = vsyncadd [#allocation6], 4294967280 }
 0x1aa   :  { %392 = vsyncpa [#allocation6], 1 }

// kernel: custom-call.26
= control target key start
LH: loop header
LB: loop body
LE: loop exit
PB: predicated region body
PF: predicated region fallthrough
CT: control target
= control target key end

     0   :  { %v37_v1 = vlaneseq  ;;  %v137_v11 = vmov -1.0   ;;  %s154_s0 = inlined_call_operand.vmem [shape: f32[1,3,3], index: 0, kind: input, shape index: {}]   ;;  %s155_s1 = inlined_call_operand.vmem [shape: f32[1,3,3], index: 1, kind: output, shape index: {}]  }
   0x1   :  { %v17_v0 = vld [vmem:[%s154_s0] sm:$0xf] }
   0x2   :  { %18 = vst [vmem:[#allocation1] sm:$0xf] %v17_v0  ;;  %v38_v3 = vand.u32 127, %v37_v1  ;;  %v41_v4 = vshrl.u32 %v37_v1, 7 }
   0x4   :  { %vm39_vm0 = vcmp.lt.s32.totalorder %v38_v3, 3  ;;  %vm48_vm1 = vcmp.le.s32.totalorder %v41_v4, %v38_v3  ;;  %vm43_vm2 = vcmp.eq.s32.totalorder %v41_v4, %v38_v3  ;;  %vm62_vm4 = vcmp.eq.s32.totalorder %v38_v3, 2 }
   0x5   :  { %vm49_vm3 = vmand %vm48_vm1, %vm39_vm0  ;;  %vm59_vm5 = vcmp.eq.s32.totalorder %v38_v3, %v41_v4  ;;  %v63_v12 = vsel %vm62_vm4, 1.0, %v137_v11  ;;  %vm70_vm6 = vcmp.eq.s32.totalorder %v38_v3, 1  ;;  %vm79_vm7 = vcmp.eq.s32.totalorder %v38_v3, 0 }
   0x6   :  { %v64_v13 = vsel %vm59_vm5, %v63_v12, 0.0 }
   0x9   :  { %v35_v2 = vld [vmem:[#allocation1] sm:$0xf] }
   0xa   :  { %36 = vst [vmem:[#allocation0] sm:$0xf] %v35_v2 }
  0x11   :  { %v44_v5 = vld [vmem:[#allocation0] sm:$0xff] }
  0x12   :  { %v45_v6 = vsel %vm43_vm2, %v44_v5, 0.0  ;;  %v50_v7 = vsel %vm49_vm3, %v44_v5, 0.0 }
  0x13   :  { %46 = vadd.xlane.f32.xlu0 %v45_v6 }
  0xa0   :  { %v47_v8 = vpop.xlane.xlu0 %46 }
  0xa1   :  { %135 = vrcp.f32 %v47_v8  ;;  %vm86_vm8 = vweird.f32 %v47_v8 }
  0xab   :  { %v136_v9 = vpop.eup %135 }
  0xac   :  { %v52_v10 = vmul.f32 %v136_v9, %v50_v7 }
  0xae   :  { %53 = vst [vmem:[#allocation4] sm:$0xff] %v52_v10 }
  0xb5   :  { %v66_v14 = vld [vmem:[#allocation4 + $0x1] ss:$0 sm:$0xff]  ;;  %v75_v17 = vld [vmem:[#allocation4] ss:$0 sm:$0xff] }
  0xb6   :  { %v67_v15 = vxor.u32 2147483648, %v66_v14  ;;  %v76_v19 = vxor.u32 2147483648, %v75_v17 }
  0xb8   :  { %v71_v16 = vmul.f32 %v67_v15, %v64_v13 }
  0xba   :  { %72 = vadd.xlane.f32.xlu0 %v71_v16 }
 0x147   :  { %v73_v18 = vpop.xlane.xlu0 %72 }
 0x148   :  { %v74_v20 = vsel %vm70_vm6, %v73_v18, %v64_v13 }
 0x149   :  { %v80_v21 = vmul.f32 %v76_v19, %v74_v20 }
 0x14b   :  { %81 = vadd.xlane.f32.xlu1 %v80_v21 }
 0x1d8   :  { %v82_v22 = vpop.xlane.xlu1 %81 }
 0x1d9   :  { %v83_v23 = vsel %vm79_vm7, %v82_v22, %v74_v20 }
 0x1da   :  { %v85_v24 = vmul.f32 %v136_v9, %v83_v23 }
 0x1dc   :  { %v87_v25 = vsel %vm86_vm8, %v83_v23, %v85_v24 }
 0x1dd   :  { %88 = vst [vmem:[#allocation2] sm:$0xff] %v87_v25 }
 0x1e4   :  { %v92_v26 = vld [vmem:[#allocation2] sm:$0xf] }
 0x1e5   :  { %94 = vst [vmem:[#allocation3] sm:$0xf] %v92_v26 }
 0x1ec   :  { %v110_v27 = vld [vmem:[#allocation3] sm:$0xf] }
 0x1ed   :  { %111 = vst [vmem:[%s155_s1] sm:$0xf] %v110_v27 }

// kernel: custom-call.27
= control target key start
LH: loop header
LB: loop body
LE: loop exit
PB: predicated region body
PF: predicated region fallthrough
CT: control target
= control target key end

     0   :  { %v37_v1 = vlaneseq  ;;  %v138_v11 = vmov -1.0   ;;  %s155_s0 = inlined_call_operand.vmem [shape: f32[1,3,3], index: 0, kind: input, shape index: {}]   ;;  %s156_s1 = inlined_call_operand.vmem [shape: f32[1,3,3], index: 1, kind: output, shape index: {}]  }
   0x1   :  { %v17_v0 = vld [vmem:[%s155_s0] sm:$0xf] }
   0x2   :  { %18 = vst [vmem:[#allocation1] sm:$0xf] %v17_v0  ;;  %v38_v3 = vand.u32 127, %v37_v1  ;;  %v41_v4 = vshrl.u32 %v37_v1, 7 }
   0x4   :  { %vm39_vm0 = vcmp.lt.s32.totalorder %v38_v3, 3  ;;  %vm48_vm1 = vcmp.ge.s32.totalorder %v41_v4, %v38_v3  ;;  %vm43_vm2 = vcmp.eq.s32.totalorder %v41_v4, %v38_v3  ;;  %vm62_vm4 = vcmp.eq.s32.totalorder %v38_v3, 0 }
   0x5   :  { %vm49_vm3 = vmand %vm48_vm1, %vm39_vm0  ;;  %vm59_vm5 = vcmp.eq.s32.totalorder %v38_v3, %v41_v4  ;;  %v63_v12 = vsel %vm62_vm4, 1.0, %v138_v11  ;;  %vm70_vm6 = vcmp.eq.s32.totalorder %v38_v3, 1  ;;  %vm80_vm7 = vcmp.eq.s32.totalorder %v38_v3, 2 }
   0x6   :  { %v64_v13 = vsel %vm59_vm5, %v63_v12, 0.0 }
   0x9   :  { %v35_v2 = vld [vmem:[#allocation1] sm:$0xf] }
   0xa   :  { %36 = vst [vmem:[#allocation0] sm:$0xf] %v35_v2 }
  0x11   :  { %v44_v5 = vld [vmem:[#allocation0] sm:$0xff] }
  0x12   :  { %v45_v6 = vsel %vm43_vm2, %v44_v5, 0.0  ;;  %v50_v7 = vsel %vm49_vm3, %v44_v5, 0.0 }
  0x13   :  { %46 = vadd.xlane.f32.xlu0 %v45_v6 }
  0xa0   :  { %v47_v8 = vpop.xlane.xlu0 %46 }
  0xa1   :  { %136 = vrcp.f32 %v47_v8  ;;  %vm87_vm8 = vweird.f32 %v47_v8 }
  0xab   :  { %v137_v9 = vpop.eup %136 }
  0xac   :  { %v52_v10 = vmul.f32 %v137_v9, %v50_v7 }
  0xae   :  { %53 = vst [vmem:[#allocation4] sm:$0xff] %v52_v10 }
  0xb5   :  { %v66_v14 = vld [vmem:[#allocation4 + $0x1] ss:$0 sm:$0xff]  ;;  %v76_v17 = vld [vmem:[#allocation4 + $0x2] ss:$0 sm:$0xff] }
  0xb6   :  { %v67_v15 = vxor.u32 2147483648, %v66_v14  ;;  %v77_v19 = vxor.u32 2147483648, %v76_v17 }
  0xb8   :  { %v71_v16 = vmul.f32 %v67_v15, %v64_v13 }
  0xba   :  { %72 = vadd.xlane.f32.xlu0 %v71_v16 }
 0x147   :  { %v73_v18 = vpop.xlane.xlu0 %72 }
 0x148   :  { %v74_v20 = vsel %vm70_vm6, %v73_v18, %v64_v13 }
 0x149   :  { %v81_v21 = vmul.f32 %v77_v19, %v74_v20 }
 0x14b   :  { %82 = vadd.xlane.f32.xlu1 %v81_v21 }
 0x1d8   :  { %v83_v22 = vpop.xlane.xlu1 %82 }
 0x1d9   :  { %v84_v23 = vsel %vm80_vm7, %v83_v22, %v74_v20 }
 0x1da   :  { %v86_v24 = vmul.f32 %v137_v9, %v84_v23 }
 0x1dc   :  { %v88_v25 = vsel %vm87_vm8, %v84_v23, %v86_v24 }
 0x1dd   :  { %89 = vst [vmem:[#allocation2] sm:$0xff] %v88_v25 }
 0x1e4   :  { %v93_v26 = vld [vmem:[#allocation2] sm:$0xf] }
 0x1e5   :  { %95 = vst [vmem:[#allocation3] sm:$0xf] %v93_v26 }
 0x1ec   :  { %v111_v27 = vld [vmem:[#allocation3] sm:$0xf] }
 0x1ed   :  { %112 = vst [vmem:[%s156_s1] sm:$0xf] %v111_v27 }

// kernel: custom-call.22
= control target key start
LH: loop header
LB: loop body
LE: loop exit
PB: predicated region body
PF: predicated region fallthrough
CT: control target
= control target key end

     0   :  { %5 = vsyncpa [#allocation6], 0  ;;  %s896_s0 = inlined_call_operand.vmem [shape: f32[2,3,3], index: 0, kind: input, shape index: {}]   ;;  %s897_s1 = inlined_call_operand.vmem [shape: f32[2,3,3], index: 1, kind: output, shape index: {0}]   ;;  %s898_s2 = inlined_call_operand.hbm [shape: s32[2,3], index: 2, kind: output, shape index: {1}]   ;;  %s899_s3 = inlined_call_operand.vmem [shape: s32[2,3], index: 3, kind: output, shape index: {2}]  }
   0x1   :  { %7 = vsyncpa [#allocation6 + $0x1], 0  ;;  %s715_s12 = smov 0   ;;  %s717_s13 = smov 0  }
   0x2   :  { %s719_s14 = smov 0   ;;  %s721_s15 = smov 0  }
   0x3 LB: > { %s736_s16 = sadd.s32 4294967295, %s687_s15   ;;  %s550_s17 = sadd.s32 4294967294, %s687_s15   ;;  %s687_s15 = sphi %s721_s15, %s907_s15   ;;  %s683_s14 = sphi %s719_s14, %s906_s14   ;;  %s679_s13 = sphi %s717_s13, %s905_s13   ;;  %s675_s12 = sphi %s715_s12, %s904_s12  }
   0x4   : > { %s740_s18 = sadd.s32 1, %s687_s15   ;;  %s17_s19 = sshrl.u32 %s687_s15, 3 }
   0x5   : > { %s18_s20 = sshrl.u32 %s740_s18, 3  ;;  %s22_s21 = sadd.s32 1, %s683_s14 }
   0x6   : > { %s19_s22 = ssub.s32 %s17_s19, %s18_s20  ;;  %p32_p0 = scmp.ne.s32.totalorder %s683_s14, %s679_s13 }
   0x7   : > { %p20_p1 = scmp.eq.s32.totalorder %s19_s22, 0  ;;  %p33_p2 = scmp.eq.s32.totalorder %s736_s16, 1 }
   0x8   : > { %p38_p3 = scmp.ne.s32.totalorder %s679_s13, %s675_s12  ;;  %p39_p4 = scmp.eq.s32.totalorder %s550_s17, 1 }
   0x9   : > { %s751_s23 = scalar_select %p20_p1, %s683_s14, %s22_s21  }
   0xa   : > { %p753_p5 = por %p33_p2, %p32_p0  ;;  %p757_p6 = por %p39_p4, %p38_p3 }
   0xb   : > { %p552_p7 = scmp.ge.s32.totalorder %s687_s15, 2 }
   0xc   : > { %s85_s26 = sand.u32 (!%p552_p7), 1, %s687_s15   ;;  %s554_s27 = sshll.u32 (!%p552_p7), %s687_s15, 2 }
   0xd   : > { %83 = sbr.rel (%p552_p7) target bundleno = 20 (0x14), region = 16  ;;  %s553_s28 = sshll.u32 (!%p552_p7), %s85_s26, 2 }
   0xe   : > { %s89_s4 = scalar_lea.vmem (!%p552_p7), %s896_s0, %s554_s27  ;;  %s87_s5 = scalar_lea.vmem (!%p552_p7), [#allocation1], %s553_s28 }
   0xf   : > { %v105_v0 = vld [vmem:[%s89_s4] sm:$0xf] (!%p552_p7) }
  0x10   : > { %106 = vst [vmem:[%s87_s5] sm:$0xf] (!%p552_p7), %v105_v0 }
  0x14 PF: > { %p555_p8 = scmp.ge.s32.totalorder %s687_s15, 1  ;;  %p122_p9 = scmp.lt.s32.totalorder %s687_s15, 3 }
  0x16   : > { %p123_p10 = pnand %p555_p8, %p122_p9 }
  0x18   : > { %126 = sbr.rel (%p123_p10) target bundleno = 451 (0x1c3), region = 50 }
  0x1f   : > { %s133_s6 = sand.u32 1, %s736_s16   ;;  %s144_s7 = sand.u32 1, %s679_s13   ;;  %v166_v1 = vlaneseq  ;;  %v693_v4 = vmov 0  }
  0x20   : > { %s773_s8 = sshll.u32 %s133_s6, 2  ;;  %s777_s9 = sshll.u32 %s144_s7, 1 }
  0x21   : > { %v780_v2 = vshrl.u32 %v166_v1, 7  ;;  %s135_s10 = scalar_lea.vmem [#allocation1], %s773_s8  ;;  %s161_s11 = sand.u32 7, %s736_s16  }
  0x22   : > { %v155_v3 = vld [vmem:[%s135_s10] sm:$0xf]  ;;  %s785_s17 = scalar_lea.vmem [#allocation4], %s161_s11  ;;  %s139_s19 = scalar_lea.vmem [#allocation3], %s773_s8 }
  0x23   : > { %156 = vst [vmem:[#allocation0] sm:$0xf] %v155_v3  ;;  %170 = vst [vmem:[#allocation9] sm:$0xff] %v780_v2  ;;  %s146_s20 = scalar_lea.vmem [#allocation5], %s777_s9  ;;  %s152_s21 = scalar_lea.vmem [#allocation8], %s777_s9 }
  0x24   : > { %165 = vst [vmem:[%s785_s17] sm:$0x1] %v693_v4  ;;  %s791_s22 = scalar_lea.vmem [#allocation7], %s161_s11  ;;  %s793_s26 = smov 0  }
  0x2a   : > { %v159_v5 = vld [vmem:[#allocation0] sm:$0xff] }
  0x2b   : > { %160 = vst [vmem:[#allocation2] sm:$0xff] %v159_v5 }
  0x2c LB: >> { %vm186_vm0 = vcmp.lt.s32.totalorder %v780_v2, 3  ;;  %v800_v8 = vstv %s691_s26  ;;  %s227_s27 = ssub.s32 128, %s691_s26  ;;  %v233_v38 = vand.u32 127, %v166_v1  ;;  %v236_v40 = vld [vmem:[%s785_s17] ss:$0 sm:$0xff]  ;;  %s239_s28 = scalar_lea.vmem [#allocation2], %s691_s26  ;;  %s691_s26 = sphi %s793_s26, %s176_s26  }
  0x2d   : >> { %vm185_vm1 = vcmp.ge.s32.totalorder %v780_v2, %v800_v8  ;;  %s245_s30 = scalar_lea.vmem [#allocation9], %s691_s26  ;;  %vm265_vm15 = vcmp.gt.s32.totalorder %v780_v2, %v800_v8  ;;  %s176_s26 = sadd.s32 1, %s691_s26  }
  0x2e   : >> { %vm187_vm3 = vmand %vm185_vm1, %vm186_vm0  ;;  %vm257_vm12 = vcmp.gt.s32.totalorder %v233_v38, %v800_v8  ;;  %vm234_vm13 = vcmp.eq.s32.totalorder %v233_v38, %v800_v8  ;;  %v247_v42 = vld [vmem:[%s245_s30] ss:$0 sm:$0xff]  ;;  %p173_p11 = scmp.ge.s32.totalorder %s176_s26, 3  }
  0x2f   : >> { %vm269_vm1 = vmand %vm265_vm15, %vm234_vm13  ;;  %s900_s6 = sshrl.u32 (%p173_p11), %s736_s16, 3  ;;  %s564_s10 = sshll.u32 (%p173_p11), %s736_s16, 2 }
  0x30   : > { %s565_s11 = sshll.u32 (%p173_p11), %s900_s6, 5 }
  0x32   : >> { %v181_v6 = vld [vmem:[#allocation2] sm:$0xff]  ;;  %v241_v41 = vld [vmem:[%s239_s28] ss:$0 sm:$0xff] }
  0x33   : >> { %v182_v7 = vand.u32 2147483647, %v181_v6 }
  0x35   : >> { %vm560_vm2 = vcmp.gt.f32.partialorder %v182_v7, -inf }
  0x36   : >> { %vm189_vm4 = vmand %vm187_vm3, %vm560_vm2 }
  0x37   : >> { %v190_v9 = vsel %vm189_vm4, %v780_v2, %v800_v8  ;;  %v191_v10 = vsel %vm189_vm4, %v182_v7, -inf }
  0x38   : >> { %v192_v11 = vrot.slane %v191_v10, 1  ;;  %v193_v12 = vrot.slane %v190_v9, 1 }
  0x3a   : >> { %vm194_vm5 = vcmp.ge.f32.partialorder %v192_v11, %v191_v10  ;;  %v197_v13 = vrot.slane %v192_v11, 1  ;;  %v198_v14 = vrot.slane %v193_v12, 1 }
  0x3b   : >> { %v195_v15 = vsel %vm194_vm5, %v192_v11, %v191_v10  ;;  %v196_v16 = vsel %vm194_vm5, %v193_v12, %v190_v9 }
  0x3c   : >> { %vm199_vm6 = vcmp.ge.f32.partialorder %v197_v13, %v195_v15  ;;  %v202_v17 = vrot.slane %v197_v13, 1  ;;  %v203_v18 = vrot.slane %v198_v14, 1 }
  0x3d   : >> { %v200_v19 = vsel %vm199_vm6, %v197_v13, %v195_v15  ;;  %v201_v20 = vsel %vm199_vm6, %v198_v14, %v196_v16 }
  0x3e   : >> { %vm204_vm7 = vcmp.ge.f32.partialorder %v202_v17, %v200_v19  ;;  %v207_v21 = vrot.slane %v202_v17, 1  ;;  %v208_v22 = vrot.slane %v203_v18, 1 }
  0x3f   : >> { %v205_v23 = vsel %vm204_vm7, %v202_v17, %v200_v19  ;;  %v206_v24 = vsel %vm204_vm7, %v203_v18, %v201_v20 }
  0x40   : >> { %vm209_vm8 = vcmp.ge.f32.partialorder %v207_v21, %v205_v23  ;;  %v212_v25 = vrot.slane %v207_v21, 1  ;;  %v213_v26 = vrot.slane %v208_v22, 1 }
  0x41   : >> { %v210_v27 = vsel %vm209_vm8, %v207_v21, %v205_v23  ;;  %v211_v28 = vsel %vm209_vm8, %v208_v22, %v206_v24 }
  0x42   : >> { %vm214_vm9 = vcmp.ge.f32.partialorder %v212_v25, %v210_v27  ;;  %v217_v29 = vrot.slane %v212_v25, 1  ;;  %v218_v30 = vrot.slane %v213_v26, 1 }
  0x43   : >> { %v215_v31 = vsel %vm214_vm9, %v212_v25, %v210_v27  ;;  %v216_v32 = vsel %vm214_vm9, %v213_v26, %v211_v28 }
  0x44   : >> { %vm219_vm10 = vcmp.ge.f32.partialorder %v217_v29, %v215_v31  ;;  %v222_v33 = vrot.slane %v217_v29, 1  ;;  %v223_v34 = vrot.slane %v218_v30, 1 }
  0x45   : >> { %v220_v35 = vsel %vm219_vm10, %v217_v29, %v215_v31  ;;  %v221_v36 = vsel %vm219_vm10, %v218_v30, %v216_v32 }
  0x46   : >> { %vm224_vm11 = vcmp.ge.f32.partialorder %v222_v33, %v220_v35 }
  0x47   : >> { %v226_v37 = vsel %vm224_vm11, %v223_v34, %v221_v36 }
  0x48   : >> { %228 = vrot.lane.b32.xlu0 %v226_v37, %s227_s27  ;;  %s357_s27 = scalar_lea.vmem (%p173_p11), %s897_s1, %s564_s10 }
  0xba   : >> { %v229_v39 = vpop.permute.xlu0 %228 }
  0xbb   : >> { %569 = vpush %v229_v39 }
  0xec   : >> { %s570_s29 = spop %569 }
  0xed   : >> { %v235_v43 = vstv %s570_s29  ;;  %s240_s4 = scalar_lea.vmem [#allocation2], %s570_s29  ;;  %s246_s5 = scalar_lea.vmem [#allocation9], %s570_s29 }
  0xee   : >> { %v242_v44 = vld [vmem:[%s240_s4] ss:$0 sm:$0xff]  ;;  %v237_v46 = vsel %vm234_vm13, %v235_v43, %v236_v40 }
  0xef   : >> { %v248_v45 = vld [vmem:[%s246_s5] ss:$0 sm:$0xff]  ;;  %243 = vst [vmem:[%s240_s4] sm:$0x1] %v241_v41  ;;  %vm251_vm14 = vcmp.ne.f32.partialorder %v242_v44, 0.0  ;;  %238 = vst [vmem:[%s785_s17] sm:$0x1] %v237_v46  ;;  %v258_v53 = vsel %vm257_vm12, %v242_v44, 0.0 }
  0xf0   : >> { %249 = vst [vmem:[%s246_s5] sm:$0x1] %v247_v42  ;;  %244 = vst [vmem:[%s239_s28] sm:$0x1] %v242_v44  ;;  %s399_s4 = sshll.u32 (%p173_p11), %s146_s20, 4  ;;  %s348_s5 = scalar_lea.sflag (%p173_p11), [#allocation6], %s144_s7  ;;  %s400_s4 = int_to_ptr.vmem [resolvable:$true] %s399_s4 }
  0xf1   : >> { %250 = vst [vmem:[%s245_s30] sm:$0x1] %v248_v45  ;;  %vm252_vm0 = vmand %vm234_vm13, %vm251_vm14  ;;  %s843_s30 = scalar_lea.hbm (%p173_p11), %s898_s2, %s565_s11  ;;  %s621_s6 = scalar_lea.vmem (%p173_p11), %s400_s4, 32 }
  0xf2   : >> { %v253_v47 = vsel %vm252_vm0, %v242_v44, 1.0  ;;  %p622_p12 = scmp.ne.s32.totalorder (%p173_p11), %s400_s4, %s621_s6  ;;  %s694_s17 = smov (%p173_p11), [#allocation5]  }
  0xf3   : >> { %v266_v48 = vsel %vm265_vm15, %v253_v47, 1.0  ;;  %s625_s10 = sshll.u32 (%p173_p11), %s694_s17, 4  ;;  %s626_s10 = int_to_ptr.vmem [resolvable:$false] %s625_s10 }
  0xf4   : >> { %619 = vrcp.f32 %v266_v48  ;;  %p623_p13 = pnand (%p173_p11), %p622_p12, %p753_p5  ;;  %s627_s8 = scalar_lea.vmem (%p173_p11), %s626_s10, 64 }
  0xf5   : > { %p628_p1 = scmp.lt.s32.totalorder (%p173_p11), %s400_s4, %s626_s10  ;;  %p629_p2 = scmp.lt.s32.totalorder (%p173_p11), %s627_s8, %s621_s6 }
  0xf6   : > { %v334_v59 = vld [vmem:[#allocation4] sm:$0x3] (%p173_p11)  ;;  %p624_p0 = pneg (%p173_p11), %p623_p13 }
  0xf7   : >> { %v262_v50 = vld [vmem:[#allocation2] sm:$0xff]  ;;  %336 = vst [vmem:[%s146_s20] sm:$0x3] (%p173_p11), %v334_v59  ;;  %p630_p3 = por (%p173_p11), %p629_p2, %p628_p1 }
  0xf8   : > { %v276_v57 = vld [vmem:[#allocation9] sm:$0xff] (%p173_p11) }
  0xf9   : > { %p631_p4 = pnand (%p173_p11), %p630_p3, %p624_p0 }
  0xfe   : >> { %v620_v49 = vpop.eup %619 }
  0xff   : >> { %v268_v51 = vmul.f32 %v620_v49, %v262_v50 }
 0x101   : >> { %v270_v52 = vsel %vm269_vm1, %v268_v51, 0.0 }
 0x102   : >> { %271 = vadd.xlane.f32.xlu0 %v270_v52 }
 0x12f   : > { %292 = vxpose.xlu0.b32.start.end [1/1] (short) (narrow) (%p173_p11), %v276_v57, 8 }
 0x18e   : > { %175 = sbr.rel (!%p173_p11) target bundleno = 44 (0x2c), region = 202 }
 0x18f   : >> { %v272_v54 = vpop.xlane.xlu0 %271 }
 0x190   : >> { %v273_v55 = vmul.f32 %v272_v54, %v258_v53 }
 0x192   : >> { %v274_v56 = vsub.f32 %v268_v51, %v273_v55 }
 0x194   : >> { %275 = vst [vmem:[#allocation2] sm:$0xff] %v274_v56 }
 0x19b   : > { %v328_v58 = vld [vmem:[#allocation2] sm:$0xf] }
 0x19c   : > { %330 = vst [vmem:[%s139_s19] sm:$0xf] %v328_v58 }
 0x1a3   : > { %v373_v60 = vld [vmem:[%s139_s19] sm:$0xf] }
 0x1a4   : > { %374 = vst [vmem:[%s357_s27] sm:$0xf] %v373_v60 }
 0x1a5   : > { %634 = shalt.err (!%p631_p4)
}
 0x1a6   : > { %s635_s7 = scalar_lea.hbm %s843_s30, 32  ;;  %s639_s11 = scalar_lea.hbm %s898_s2, 32 }
 0x1a7   : > { %p636_p8 = scmp.ne.s32.totalorder %s843_s30, %s635_s7  ;;  %p640_p11 = scmp.lt.u32.totalorder %s843_s30, %s898_s2 }
 0x1a8   : > { %p641_p12 = scmp.lt.u32.totalorder %s639_s11, %s635_s7  ;;  %p643_p0 = scmp.lt.u32.totalorder %s635_s7, %s843_s30 }
 0x1a9   : > { %p637_p9 = pnand %p636_p8, %p753_p5 }
 0x1aa   : > { %p642_p13 = por %p641_p12, %p640_p11 }
 0x1ab   : > { %p638_p10 = pneg %p637_p9 }
 0x1ac   : > { %p644_p1 = por %p643_p0, %p642_p13 }
 0x1ae   : > { %p645_p2 = pnand %p644_p1, %p638_p10 }
 0x1b0   : > { %648 = shalt.err (!%p645_p2)
}
 0x1b1   : > { %571 = dma.vmem_to_hbm [thread:$0]  (%p753_p5), %s400_s4, 32, %s843_s30, %s348_s5   ;;  %v308_v61 = vpop.trf.xlu0 }
 0x1b2   : > { %324 = vst [vmem:[%s791_s22] sm:$0x1] %v308_v61  ;;  %s903_s6 = sshrl.u32 (%p753_p5), %s736_s16, 3 }
 0x1b3   : > { %s566_s28 = sshll.u32 (%p753_p5), %s903_s6, 1 }
 0x1b4   : > { %405 = sbr.rel (!%p753_p5) target bundleno = 451 (0x1c3), region = 96  ;;  %s408_s10 = scalar_lea.vmem (%p753_p5), %s899_s3, %s566_s28 }
 0x1b9   : > { %v340_v62 = vld [vmem:[#allocation7] sm:$0x3] }
 0x1ba   : > { %342 = vst [vmem:[%s152_s21] sm:$0x3] %v340_v62 }
 0x1c1   : > { %v424_v63 = vld [vmem:[%s152_s21] sm:$0x3] }
 0x1c2   : > { %425 = vst [vmem:[%s408_s10] sm:$0x3] %v424_v63 }
 0x1c3 PF: > { %s452_s22 = sand.u32 1, %s675_s12   ;;  %p574_p5 = pnand %p552_p7, %p757_p6 }
 0x1c4   : > { %s453_s24 = scalar_lea.sflag [#allocation6], %s452_s22 }
 0x1c5   : > { %670 = dma.done.wait (!%p574_p5), %s453_s24, 32  }
 0x1c6   : > { %672 = vsyncadd (!%p574_p5), %s453_s24, 4294967264  ;;  %p10_p3 = scmp.ge.s32.totalorder %s740_s18, 4   ;;  %s904_s12 = smov %s679_s13 }
 0x1c7   : > { %s905_s13 = smov %s683_s14  ;;  %s906_s14 = smov %s751_s23 }
 0x1c8   : > { %s907_s15 = smov %s740_s18  ;;  %12 = sbr.rel (!%p10_p3) target bundleno = 3 (0x3), region = 213 }
 0x1cf   :  { %465 = vsyncpa [#allocation6], 1 }
 0x1d0   :  { %467 = vsyncpa [#allocation6 + $0x1], 1 }

// kernel: custom-call.23
= control target key start
LH: loop header
LB: loop body
LE: loop exit
PB: predicated region body
PF: predicated region fallthrough
CT: control target
= control target key end

     0   :  { %s342_s6 = smov 0   ;;  %s344_s7 = smov 0   ;;  %s389_s0 = inlined_call_operand.vmem [shape: f32[2,1,3,3], index: 0, kind: input, shape index: {}]   ;;  %s390_s1 = inlined_call_operand.vmem [shape: f32[2,1,3,3], index: 1, kind: output, shape index: {}]  }
   0x1   :  { %s346_s8 = smov 0  }
   0x2 LB: > { %s268_s9 = sadd.s32 4294967295, %s329_s8   ;;  %s33_s10 = sadd.s32 1, %s325_s7  ;;  %s329_s8 = sphi %s346_s8, %s7_s8   ;;  %s325_s7 = sphi %s344_s7, %s392_s7   ;;  %s321_s6 = sphi %s342_s6, %s391_s6  }
   0x3   : > { %p35_p0 = scmp.ge.s32.totalorder %s33_s10, 2  ;;  %p270_p1 = scmp.ge.s32.totalorder %s329_s8, 2 }
   0x4   : > { %s49_s11 = sand.u32 (!%p270_p1), 1, %s329_s8   ;;  %s272_s12 = sshll.u32 (!%p270_p1), %s325_s7, 2 }
   0x5   : > { %s394_s10 = smov (%p35_p0, %s33_s10), 0  ;;  %47 = sbr.rel (%p270_p1) target bundleno = 12 (0xc), region = 16 }
   0x6   : > { %s271_s13 = sshll.u32 (!%p270_p1), %s49_s11, 2  ;;  %s56_s16 = scalar_lea.vmem (!%p270_p1), %s389_s0, %s272_s12 }
   0x7   : > { %v72_v0 = vld [vmem:[%s56_s16] sm:$0xf] (!%p270_p1)  ;;  %s51_s17 = scalar_lea.vmem (!%p270_p1), [#allocation1], %s271_s13 }
   0x8   : > { %73 = vst [vmem:[%s51_s17] sm:$0xf] (!%p270_p1), %v72_v0 }
   0xc PF: > { %p273_p2 = scmp.ge.s32.totalorder %s329_s8, 1  ;;  %p89_p3 = scmp.lt.s32.totalorder %s329_s8, 3 }
   0xe   : > { %p90_p4 = pnand %p273_p2, %p89_p3 }
  0x10   : > { %93 = sbr.rel (%p90_p4) target bundleno = 511 (0x1ff), region = 50 }
  0x17   : > { %s369_s18 = sand.u32 1, %s268_s9   ;;  %v111_v1 = vlaneseq  ;;  %v331_v11 = vmov -1.0   ;;  %s277_s22 = sshll.u32 %s321_s6, 2 }
  0x18   : > { %s274_s19 = sshll.u32 %s369_s18, 2  ;;  %s177_s25 = scalar_lea.vmem %s390_s1, %s277_s22 }
  0x19   : > { %s102_s20 = scalar_lea.vmem [#allocation1], %s274_s19  ;;  %v112_v3 = vand.u32 127, %v111_v1  ;;  %v115_v4 = vshrl.u32 %v111_v1, 7  ;;  %s106_s21 = scalar_lea.vmem [#allocation3], %s274_s19 }
  0x1a   : > { %v109_v2 = vld [vmem:[%s102_s20] sm:$0xf] }
  0x1b   : > { %110 = vst [vmem:[#allocation0] sm:$0xf] %v109_v2  ;;  %vm113_vm0 = vcmp.lt.s32.totalorder %v112_v3, 3  ;;  %vm122_vm1 = vcmp.le.s32.totalorder %v115_v4, %v112_v3  ;;  %vm117_vm2 = vcmp.eq.s32.totalorder %v115_v4, %v112_v3  ;;  %vm136_vm4 = vcmp.eq.s32.totalorder %v112_v3, 2 }
  0x1c   : > { %vm123_vm3 = vmand %vm122_vm1, %vm113_vm0  ;;  %vm133_vm5 = vcmp.eq.s32.totalorder %v112_v3, %v115_v4  ;;  %v137_v12 = vsel %vm136_vm4, 1.0, %v331_v11  ;;  %vm144_vm6 = vcmp.eq.s32.totalorder %v112_v3, 1  ;;  %vm153_vm7 = vcmp.eq.s32.totalorder %v112_v3, 0 }
  0x1d   : > { %v138_v13 = vsel %vm133_vm5, %v137_v12, 0.0 }
  0x22   : > { %v118_v5 = vld [vmem:[#allocation0] sm:$0xff] }
  0x23   : > { %v119_v6 = vsel %vm117_vm2, %v118_v5, 0.0  ;;  %v124_v7 = vsel %vm123_vm3, %v118_v5, 0.0 }
  0x24   : > { %120 = vadd.xlane.f32.xlu0 %v119_v6 }
  0xb1   : > { %v121_v8 = vpop.xlane.xlu0 %120 }
  0xb2   : > { %305 = vrcp.f32 %v121_v8  ;;  %vm160_vm8 = vweird.f32 %v121_v8 }
  0xbc   : > { %v306_v9 = vpop.eup %305 }
  0xbd   : > { %v126_v10 = vmul.f32 %v306_v9, %v124_v7 }
  0xbf   : > { %127 = vst [vmem:[#allocation4] sm:$0xff] %v126_v10 }
  0xc6   : > { %v140_v14 = vld [vmem:[#allocation4 + $0x1] ss:$0 sm:$0xff]  ;;  %v149_v17 = vld [vmem:[#allocation4] ss:$0 sm:$0xff] }
  0xc7   : > { %v141_v15 = vxor.u32 2147483648, %v140_v14  ;;  %v150_v19 = vxor.u32 2147483648, %v149_v17 }
  0xc9   : > { %v145_v16 = vmul.f32 %v141_v15, %v138_v13 }
  0xcb   : > { %146 = vadd.xlane.f32.xlu0 %v145_v16 }
 0x158   : > { %v147_v18 = vpop.xlane.xlu0 %146 }
 0x159   : > { %v148_v20 = vsel %vm144_vm6, %v147_v18, %v138_v13 }
 0x15a   : > { %v154_v21 = vmul.f32 %v150_v19, %v148_v20 }
 0x15c   : > { %155 = vadd.xlane.f32.xlu1 %v154_v21 }
 0x1e9   : > { %v156_v22 = vpop.xlane.xlu1 %155 }
 0x1ea   : > { %v157_v23 = vsel %vm153_vm7, %v156_v22, %v148_v20 }
 0x1eb   : > { %v159_v24 = vmul.f32 %v306_v9, %v157_v23 }
 0x1ed   : > { %v161_v25 = vsel %vm160_vm8, %v157_v23, %v159_v24 }
 0x1ee   : > { %162 = vst [vmem:[#allocation2] sm:$0xff] %v161_v25 }
 0x1f5   : > { %v166_v26 = vld [vmem:[#allocation2] sm:$0xf] }
 0x1f6   : > { %168 = vst [vmem:[%s106_s21] sm:$0xf] %v166_v26 }
 0x1fd   : > { %v193_v27 = vld [vmem:[%s106_s21] sm:$0xf] }
 0x1fe   : > { %194 = vst [vmem:[%s177_s25] sm:$0xf] %v193_v27 }
 0x1ff PF: > { %s7_s8 = sadd.s32 1, %s329_s8   ;;  %s391_s6 = smov %s325_s7 }
 0x200   : > { %p4_p5 = scmp.ge.s32.totalorder %s7_s8, 4   ;;  %s392_s7 = smov %s394_s10 }
 0x202   :  { %6 = sbr.rel (!%p4_p5) target bundleno = 2 (0x2), region = 111 }

// kernel: custom-call.24
= control target key start
LH: loop header
LB: loop body
LE: loop exit
PB: predicated region body
PF: predicated region fallthrough
CT: control target
= control target key end

     0   :  { %s343_s6 = smov 0   ;;  %s345_s7 = smov 0   ;;  %s390_s0 = inlined_call_operand.vmem [shape: f32[2,1,3,3], index: 0, kind: input, shape index: {}]   ;;  %s391_s1 = inlined_call_operand.vmem [shape: f32[2,1,3,3], index: 1, kind: output, shape index: {}]  }
   0x1   :  { %s347_s8 = smov 0  }
   0x2 LB: > { %s269_s9 = sadd.s32 4294967295, %s330_s8   ;;  %s33_s10 = sadd.s32 1, %s326_s7  ;;  %s330_s8 = sphi %s347_s8, %s7_s8   ;;  %s326_s7 = sphi %s345_s7, %s393_s7   ;;  %s322_s6 = sphi %s343_s6, %s392_s6  }
   0x3   : > { %p35_p0 = scmp.ge.s32.totalorder %s33_s10, 2  ;;  %p271_p1 = scmp.ge.s32.totalorder %s330_s8, 2 }
   0x4   : > { %s49_s11 = sand.u32 (!%p271_p1), 1, %s330_s8   ;;  %s273_s12 = sshll.u32 (!%p271_p1), %s326_s7, 2 }
   0x5   : > { %s395_s10 = smov (%p35_p0, %s33_s10), 0  ;;  %47 = sbr.rel (%p271_p1) target bundleno = 12 (0xc), region = 16 }
   0x6   : > { %s272_s13 = sshll.u32 (!%p271_p1), %s49_s11, 2  ;;  %s56_s16 = scalar_lea.vmem (!%p271_p1), %s390_s0, %s273_s12 }
   0x7   : > { %v72_v0 = vld [vmem:[%s56_s16] sm:$0xf] (!%p271_p1)  ;;  %s51_s17 = scalar_lea.vmem (!%p271_p1), [#allocation1], %s272_s13 }
   0x8   : > { %73 = vst [vmem:[%s51_s17] sm:$0xf] (!%p271_p1), %v72_v0 }
   0xc PF: > { %p274_p2 = scmp.ge.s32.totalorder %s330_s8, 1  ;;  %p89_p3 = scmp.lt.s32.totalorder %s330_s8, 3 }
   0xe   : > { %p90_p4 = pnand %p274_p2, %p89_p3 }
  0x10   : > { %93 = sbr.rel (%p90_p4) target bundleno = 511 (0x1ff), region = 50 }
  0x17   : > { %s370_s18 = sand.u32 1, %s269_s9   ;;  %v111_v1 = vlaneseq  ;;  %v332_v11 = vmov -1.0   ;;  %s278_s22 = sshll.u32 %s322_s6, 2 }
  0x18   : > { %s275_s19 = sshll.u32 %s370_s18, 2  ;;  %s178_s25 = scalar_lea.vmem %s391_s1, %s278_s22 }
  0x19   : > { %s102_s20 = scalar_lea.vmem [#allocation1], %s275_s19  ;;  %v112_v3 = vand.u32 127, %v111_v1  ;;  %v115_v4 = vshrl.u32 %v111_v1, 7  ;;  %s106_s21 = scalar_lea.vmem [#allocation3], %s275_s19 }
  0x1a   : > { %v109_v2 = vld [vmem:[%s102_s20] sm:$0xf] }
  0x1b   : > { %110 = vst [vmem:[#allocation0] sm:$0xf] %v109_v2  ;;  %vm113_vm0 = vcmp.lt.s32.totalorder %v112_v3, 3  ;;  %vm122_vm1 = vcmp.ge.s32.totalorder %v115_v4, %v112_v3  ;;  %vm117_vm2 = vcmp.eq.s32.totalorder %v115_v4, %v112_v3  ;;  %vm136_vm4 = vcmp.eq.s32.totalorder %v112_v3, 0 }
  0x1c   : > { %vm123_vm3 = vmand %vm122_vm1, %vm113_vm0  ;;  %vm133_vm5 = vcmp.eq.s32.totalorder %v112_v3, %v115_v4  ;;  %v137_v12 = vsel %vm136_vm4, 1.0, %v332_v11  ;;  %vm144_vm6 = vcmp.eq.s32.totalorder %v112_v3, 1  ;;  %vm154_vm7 = vcmp.eq.s32.totalorder %v112_v3, 2 }
  0x1d   : > { %v138_v13 = vsel %vm133_vm5, %v137_v12, 0.0 }
  0x22   : > { %v118_v5 = vld [vmem:[#allocation0] sm:$0xff] }
  0x23   : > { %v119_v6 = vsel %vm117_vm2, %v118_v5, 0.0  ;;  %v124_v7 = vsel %vm123_vm3, %v118_v5, 0.0 }
  0x24   : > { %120 = vadd.xlane.f32.xlu0 %v119_v6 }
  0xb1   : > { %v121_v8 = vpop.xlane.xlu0 %120 }
  0xb2   : > { %306 = vrcp.f32 %v121_v8  ;;  %vm161_vm8 = vweird.f32 %v121_v8 }
  0xbc   : > { %v307_v9 = vpop.eup %306 }
  0xbd   : > { %v126_v10 = vmul.f32 %v307_v9, %v124_v7 }
  0xbf   : > { %127 = vst [vmem:[#allocation4] sm:$0xff] %v126_v10 }
  0xc6   : > { %v140_v14 = vld [vmem:[#allocation4 + $0x1] ss:$0 sm:$0xff]  ;;  %v150_v17 = vld [vmem:[#allocation4 + $0x2] ss:$0 sm:$0xff] }
  0xc7   : > { %v141_v15 = vxor.u32 2147483648, %v140_v14  ;;  %v151_v19 = vxor.u32 2147483648, %v150_v17 }
  0xc9   : > { %v145_v16 = vmul.f32 %v141_v15, %v138_v13 }
  0xcb   : > { %146 = vadd.xlane.f32.xlu0 %v145_v16 }
 0x158   : > { %v147_v18 = vpop.xlane.xlu0 %146 }
 0x159   : > { %v148_v20 = vsel %vm144_vm6, %v147_v18, %v138_v13 }
 0x15a   : > { %v155_v21 = vmul.f32 %v151_v19, %v148_v20 }
 0x15c   : > { %156 = vadd.xlane.f32.xlu1 %v155_v21 }
 0x1e9   : > { %v157_v22 = vpop.xlane.xlu1 %156 }
 0x1ea   : > { %v158_v23 = vsel %vm154_vm7, %v157_v22, %v148_v20 }
 0x1eb   : > { %v160_v24 = vmul.f32 %v307_v9, %v158_v23 }
 0x1ed   : > { %v162_v25 = vsel %vm161_vm8, %v158_v23, %v160_v24 }
 0x1ee   : > { %163 = vst [vmem:[#allocation2] sm:$0xff] %v162_v25 }
 0x1f5   : > { %v167_v26 = vld [vmem:[#allocation2] sm:$0xf] }
 0x1f6   : > { %169 = vst [vmem:[%s106_s21] sm:$0xf] %v167_v26 }
 0x1fd   : > { %v194_v27 = vld [vmem:[%s106_s21] sm:$0xf] }
 0x1fe   : > { %195 = vst [vmem:[%s178_s25] sm:$0xf] %v194_v27 }
 0x1ff PF: > { %s7_s8 = sadd.s32 1, %s330_s8   ;;  %s392_s6 = smov %s326_s7 }
 0x200   : > { %p4_p5 = scmp.ge.s32.totalorder %s7_s8, 4   ;;  %s393_s7 = smov %s395_s10 }
 0x202   :  { %6 = sbr.rel (!%p4_p5) target bundleno = 2 (0x2), region = 112 }

// kernel: stn_pallas.1
= control target key start
LH: loop header
LB: loop body
LE: loop exit
PB: predicated region body
PF: predicated region fallthrough
CT: control target
= control target key end

     0   :  { %s715_s9 = smov 0   ;;  %s717_s10 = smov 0   ;;  %s805_s0 = inlined_call_operand.vmem [shape: f32[2,8,256], index: 0, kind: input, shape index: {}]   ;;  %s806_s1 = inlined_call_operand.vmem [shape: bf16[2,64,16], index: 1, kind: input, shape index: {}]   ;;  %s807_s2 = inlined_call_operand.vmem [shape: f32[2,4,256], index: 2, kind: output, shape index: {}]  }
   0x1   :  { %s719_s11 = smov 0  }
   0x2 LB: > { %s24_s12 = sadd.s32 1, %s693_s10  ;;  %p620_p0 = scmp.ge.s32.totalorder %s697_s11, 1  ;;  %s697_s11 = sphi %s719_s11, %s12_s11   ;;  %s693_s10 = sphi %s717_s10, %s809_s10   ;;  %s689_s9 = sphi %s715_s9, %s808_s9  }
   0x3   : > { %p26_p1 = scmp.ge.s32.totalorder %s24_s12, 2  ;;  %p143_p2 = scmp.lt.s32.totalorder %s697_s11, 3 }
   0x5   : > { %s811_s12 = smov (%p26_p1, %s24_s12), 0  ;;  %p144_p3 = pnand %p620_p0, %p143_p2 }
   0x6   : > { %p179_p4 = scmp.lt.s32.totalorder (!%p144_p3), %s689_s9, 1  ;;  %v208_v0 = vlaneseq (!%p144_p3)  ;;  %v699_v1 = vmov (!%p144_p3), 0   ;;  %vm293_vm8 = vcmask (!%p144_p3), 130048  }
   0x7   : > { %147 = sbr.rel (%p144_p3) target bundleno = 281 (0x119), region = 28  ;;  %338 = vmatprep.mubr.bf16.mxu0 (!%p144_p3), %v699_v1  ;;  %358 = vmatprep.mubr.bf16.mxu1 (!%p144_p3), %v699_v1 }
   0x8   : > { %v735_v2 = vshrl.u32 (!%p144_p3), %v208_v0, 7 }
   0xa   : > { %v225_v4 = vsub.s32 (!%p144_p3), 4, %v735_v2  ;;  %v249_v5 = vsub.s32 (!%p144_p3), 5, %v735_v2  ;;  %v213_v8 = vsub.s32 (!%p144_p3), 0, %v735_v2  ;;  %v237_v9 = vsub.s32 (!%p144_p3), 1, %v735_v2 }
   0xb   : > { %v758_v12 = vadd.s32 (!%p144_p3), 8, %v735_v2  ;;  %v381_v40 = vsub.s32 (!%p144_p3), 2, %v735_v2  ;;  %v405_v41 = vsub.s32 (!%p144_p3), 3, %v735_v2  ;;  %v393_v42 = vsub.s32 (!%p144_p3), 6, %v735_v2 }
   0xc   : > { %v417_v43 = vsub.s32 (!%p144_p3), 7, %v735_v2 }
   0xe   : > { %s813_s9 = smov (!%p179_p4, %s689_s9), 1 }
   0xf   : > { %s637_s13 = sshll.u32 %s813_s9, 4  ;;  %s638_s14 = sshll.u32 %s813_s9, 5 }
  0x10   : > { %s186_s17 = scalar_lea.vmem %s805_s0, %s637_s13  ;;  %s745_s20 = scalar_lea.vmem %s806_s1, %s638_s14 }
  0x11   : > { %v747_v3 = vld [vmem:[%s186_s17 + $0x8] sm:$0xff]  ;;  %v751_v6 = vld [vmem:[%s186_s17] sm:$0xff]  ;;  %v672_v37 = vld [vmem:[%s745_s20 + $0x10] sm:$0xff]   ;;  %s639_s21 = sshll.u32 %s813_s9, 3 }
  0x12   : > { %v644_v7 = vtrunc.f32 %v747_v3  ;;  %v642_v10 = vtrunc.f32 %v751_v6  ;;  %v230_v14 = vrot.slane %v747_v3, %v225_v4  ;;  %v254_v15 = vrot.slane %v747_v3, %v249_v5  ;;  %v671_v36 = vld [vmem:[%s745_s20] sm:$0xff]   ;;  %v673_v38 = vld [vmem:[%s745_s20 + $0x8] sm:$0xff]   ;;  %v674_v39 = vld [vmem:[%s745_s20 + $0x18] sm:$0xff]   ;;  %s201_s24 = scalar_lea.vmem %s807_s2, %s639_s21 }
  0x13   : > { %v226_v19 = vrot.slane %v751_v6, %v225_v4  ;;  %v250_v21 = vrot.slane %v751_v6, %v249_v5  ;;  %v398_v48 = vrot.slane %v747_v3, %v393_v42  ;;  %v422_v49 = vrot.slane %v747_v3, %v417_v43 }
  0x14   : > { %v645_v11 = vcvt.f32.s32 %v644_v7  ;;  %v643_v13 = vcvt.f32.s32 %v642_v10  ;;  %v394_v50 = vrot.slane %v751_v6, %v393_v42  ;;  %v418_v51 = vrot.slane %v751_v6, %v417_v43 }
  0x16   : > { %v218_v16 = vrot.slane %v645_v11, %v213_v8  ;;  %v242_v17 = vrot.slane %v645_v11, %v237_v9  ;;  %v214_v18 = vrot.slane %v643_v13, %v213_v8  ;;  %v238_v20 = vrot.slane %v643_v13, %v237_v9 }
  0x17   : > { %v386_v44 = vrot.slane %v645_v11, %v381_v40  ;;  %v410_v45 = vrot.slane %v645_v11, %v405_v41  ;;  %v382_v46 = vrot.slane %v643_v13, %v381_v40  ;;  %v406_v47 = vrot.slane %v643_v13, %v405_v41 }
  0x18   : > { %vm220_vm0 = vcmp.eq.s32.totalorder %v735_v2, %v218_v16  ;;  %vm222_vm1 = vcmp.eq.s32.totalorder %v758_v12, %v218_v16  ;;  %vm244_vm2 = vcmp.eq.s32.totalorder %v735_v2, %v242_v17  ;;  %vm246_vm3 = vcmp.eq.s32.totalorder %v758_v12, %v242_v17 }
  0x19   : > { %v232_v22 = vsel %vm220_vm0, %v230_v14, 0.0  ;;  %v234_v23 = vsel %vm222_vm1, %v230_v14, 0.0  ;;  %v256_v24 = vsel %vm244_vm2, %v254_v15, 0.0  ;;  %v258_v25 = vsel %vm246_vm3, %v254_v15, 0.0 }
  0x1a   : > { %v260_v26 = vadd.f32 %v256_v24, %v232_v22  ;;  %v262_v27 = vadd.f32 %v258_v25, %v234_v23  ;;  %vm219_vm4 = vcmp.eq.s32.totalorder %v735_v2, %v214_v18  ;;  %vm221_vm5 = vcmp.eq.s32.totalorder %v758_v12, %v214_v18 }
  0x1b   : > { %v231_v28 = vsel %vm219_vm4, %v226_v19, 0.0  ;;  %v233_v29 = vsel %vm221_vm5, %v226_v19, 0.0  ;;  %vm243_vm6 = vcmp.eq.s32.totalorder %v735_v2, %v238_v20  ;;  %vm245_vm7 = vcmp.eq.s32.totalorder %v758_v12, %v238_v20 }
  0x1c   : > { %v264_v30 = vpack.c.bf16 %v262_v27, %v260_v26  ;;  %v255_v31 = vsel %vm243_vm6, %v250_v21, 0.0  ;;  %v257_v32 = vsel %vm245_vm7, %v250_v21, 0.0  ;;  %vm388_vm9 = vcmp.eq.s32.totalorder %v735_v2, %v386_v44 }
  0x1d   : > { %v259_v33 = vadd.f32 %v255_v31, %v231_v28  ;;  %v261_v34 = vadd.f32 %v257_v32, %v233_v29  ;;  %vm412_vm10 = vcmp.eq.s32.totalorder %v735_v2, %v410_v45  ;;  %vm387_vm11 = vcmp.eq.s32.totalorder %v735_v2, %v382_v46 }
  0x1e   : > { %306 = vmatprep.subr.bf16.mxu0 %v264_v30  ;;  %640 = vmatprep.subr.bf16.mxu1 %v264_v30  ;;  %vm411_vm12 = vcmp.eq.s32.totalorder %v735_v2, %v406_v47  ;;  %vm389_vm13 = vcmp.eq.s32.totalorder %v758_v12, %v382_v46  ;;  %vm413_vm14 = vcmp.eq.s32.totalorder %v758_v12, %v406_v47  ;;  %v400_v52 = vsel %vm388_vm9, %v398_v48, 0.0 }
  0x1f   : > { %v263_v35 = vpack.c.bf16 %v261_v34, %v259_v33  ;;  %vm390_vm15 = vcmp.eq.s32.totalorder %v758_v12, %v386_v44  ;;  %vm414_vm0 = vcmp.eq.s32.totalorder %v758_v12, %v410_v45  ;;  %v424_v53 = vsel %vm412_vm10, %v422_v49, 0.0 }
  0x20   : > { %v399_v54 = vsel %vm387_vm11, %v394_v50, 0.0  ;;  %v423_v55 = vsel %vm411_vm12, %v418_v51, 0.0  ;;  %v401_v56 = vsel %vm389_vm13, %v394_v50, 0.0  ;;  %v425_v57 = vsel %vm413_vm14, %v418_v51, 0.0 }
  0x21   : > { %307 = vmatpush1.bf16.msra.mxu0 %v263_v35  ;;  %641 = vmatpush1.bf16.msra.mxu1 %v263_v35  ;;  %v402_v58 = vsel %vm390_vm15, %v398_v48, 0.0  ;;  %v426_v59 = vsel %vm414_vm0, %v422_v49, 0.0  ;;  %v428_v60 = vadd.f32 %v424_v53, %v400_v52  ;;  %v427_v61 = vadd.f32 %v423_v55, %v399_v54 }
  0x22   : > { %v429_v62 = vadd.f32 %v425_v57, %v401_v56  ;;  %vm503_vm1 = vcmask 1040384   ;;  %vm506_vm2 = vcmask 1041408   ;;  %vm509_vm3 = vcmask 1042432  }
  0x24   : > { %631 = vmatmul.mubr.msk.bf16.vlgmr.msra.gmra.mrb[0].mxu0 %vm293_vm8, %v671_v36  ;;  %633 = vmatmul.mubr.msk.bf16.vlgmr.msra.gmra.mrb[0].mxu1 %vm293_vm8, %v672_v37 }
  0x25   : > { %348 = vmatprep.mubr.bf16.mxu0 %v699_v1  ;;  %368 = vmatprep.mubr.bf16.mxu1 %v699_v1  ;;  %v430_v1 = vadd.f32 %v426_v59, %v402_v58 }
  0x2c   : > { %632 = vmatmul.mubr.msk.bf16.gmra.mrb[4].mxu0 %vm293_vm8, %v673_v38  ;;  %634 = vmatmul.mubr.msk.bf16.gmra.mrb[4].mxu1 %vm293_vm8, %v674_v39 }
  0xf7   : > { %v340_v63 = vpop.f32.mrb[0].mxu0  ;;  %v360_v0 = vpop.f32.mrb[0].mxu1 }
  0xf8   : > { %v467_v2 = vmul.f32 %v427_v61, %v360_v0  ;;  %v342_v3 = vpop.f32.mrb[1].mxu0  ;;  %v362_v4 = vpop.f32.mrb[1].mxu1  ;;  %v431_v8 = vmul.f32 %v427_v61, %v340_v63 }
  0xf9   : > { %v468_v5 = vmul.f32 %v428_v60, %v362_v4  ;;  %v344_v6 = vpop.f32.mrb[2].mxu0  ;;  %v364_v7 = vpop.f32.mrb[2].mxu1  ;;  %v432_v13 = vmul.f32 %v428_v60, %v342_v3 }
  0xfa   : > { %v433_v9 = vmul.f32 %v429_v62, %v344_v6  ;;  %v469_v10 = vmul.f32 %v429_v62, %v364_v7  ;;  %v346_v11 = vpop.f32.mrb[3].mxu0  ;;  %v366_v12 = vpop.f32.mrb[3].mxu1 }
  0xfb   : > { %v434_v14 = vmul.f32 %v430_v1, %v346_v11  ;;  %v470_v15 = vmul.f32 %v430_v1, %v366_v12 }
  0xfc   : > { %v435_v16 = vadd.f32 %v433_v9, %v431_v8  ;;  %v471_v17 = vadd.f32 %v469_v10, %v467_v2 }
  0xfd   : > { %v442_v18 = vadd.f32 %v434_v14, %v432_v13  ;;  %v478_v19 = vadd.f32 %v470_v15, %v468_v5 }
  0xfe   : > { %v436_v20 = vrot.slane %v435_v16, 4  ;;  %v472_v21 = vrot.slane %v471_v17, 4 }
  0xff   : > { %v443_v22 = vrot.slane %v442_v18, 4  ;;  %v479_v23 = vrot.slane %v478_v19, 4  ;;  %v350_v24 = vpop.f32.mrb[4].mxu0  ;;  %v370_v25 = vpop.f32.mrb[4].mxu1 }
 0x100   : > { %v437_v26 = vadd.f32 %v436_v20, %v435_v16  ;;  %v485_v27 = vmul.f32 %v427_v61, %v370_v25  ;;  %v352_v28 = vpop.f32.mrb[5].mxu0  ;;  %v372_v29 = vpop.f32.mrb[5].mxu1  ;;  %v473_v30 = vadd.f32 %v472_v21, %v471_v17  ;;  %v449_v36 = vmul.f32 %v427_v61, %v350_v24 }
 0x101   : > { %v444_v31 = vadd.f32 %v443_v22, %v442_v18  ;;  %v486_v32 = vmul.f32 %v428_v60, %v372_v29  ;;  %v354_v33 = vpop.f32.mrb[6].mxu0  ;;  %v374_v34 = vpop.f32.mrb[6].mxu1  ;;  %v480_v35 = vadd.f32 %v479_v23, %v478_v19  ;;  %v450_v41 = vmul.f32 %v428_v60, %v352_v28 }
 0x102   : > { %v451_v37 = vmul.f32 %v429_v62, %v354_v33  ;;  %v487_v38 = vmul.f32 %v429_v62, %v374_v34  ;;  %v356_v39 = vpop.f32.mrb[7].mxu0  ;;  %v376_v40 = vpop.f32.mrb[7].mxu1  ;;  %v438_v44 = vrot.slane %v437_v26, 2  ;;  %v474_v47 = vrot.slane %v473_v30, 2 }
 0x103   : > { %v452_v42 = vmul.f32 %v430_v1, %v356_v39  ;;  %v488_v43 = vmul.f32 %v430_v1, %v376_v40  ;;  %v445_v48 = vrot.slane %v444_v31, 2  ;;  %v481_v51 = vrot.slane %v480_v35, 2 }
 0x104   : > { %v453_v45 = vadd.f32 %v451_v37, %v449_v36  ;;  %v489_v46 = vadd.f32 %v487_v38, %v485_v27  ;;  %v439_v56 = vadd.f32 %v438_v44, %v437_v26  ;;  %v475_v59 = vadd.f32 %v474_v47, %v473_v30 }
 0x105   : > { %v460_v49 = vadd.f32 %v452_v42, %v450_v41  ;;  %v496_v50 = vadd.f32 %v488_v43, %v486_v32  ;;  %v446_v61 = vadd.f32 %v445_v48, %v444_v31  ;;  %v482_v63 = vadd.f32 %v481_v51, %v480_v35 }
 0x106   : > { %v454_v52 = vrot.slane %v453_v45, 4  ;;  %v490_v53 = vrot.slane %v489_v46, 4  ;;  %v440_v4 = vrot.slane %v439_v56, 1  ;;  %v476_v7 = vrot.slane %v475_v59, 1 }
 0x107   : > { %v461_v54 = vrot.slane %v460_v49, 4  ;;  %v497_v55 = vrot.slane %v496_v50, 4  ;;  %v447_v8 = vrot.slane %v446_v61, 1  ;;  %v483_v11 = vrot.slane %v482_v63, 1 }
 0x108   : > { %v455_v57 = vadd.f32 %v454_v52, %v453_v45  ;;  %v491_v58 = vadd.f32 %v490_v53, %v489_v46  ;;  %v441_v16 = vadd.f32 %v440_v4, %v439_v56  ;;  %v477_v18 = vadd.f32 %v476_v7, %v475_v59 }
 0x109   : > { %v462_v60 = vadd.f32 %v461_v54, %v460_v49  ;;  %v498_v62 = vadd.f32 %v497_v55, %v496_v50  ;;  %v448_v19 = vadd.f32 %v447_v8, %v446_v61  ;;  %v484_v21 = vadd.f32 %v483_v11, %v482_v63 }
 0x10a   : > { %v456_v0 = vrot.slane %v455_v57, 2  ;;  %v492_v1 = vrot.slane %v491_v58, 2 }
 0x10b   : > { %v463_v2 = vrot.slane %v462_v60, 2  ;;  %v499_v3 = vrot.slane %v498_v62, 2 }
 0x10c   : > { %v457_v5 = vadd.f32 %v456_v0, %v455_v57  ;;  %v493_v6 = vadd.f32 %v492_v1, %v491_v58 }
 0x10d   : > { %v464_v9 = vadd.f32 %v463_v2, %v462_v60  ;;  %v500_v10 = vadd.f32 %v499_v3, %v498_v62 }
 0x10e   : > { %v458_v12 = vrot.slane %v457_v5, 1  ;;  %v494_v13 = vrot.slane %v493_v6, 1 }
 0x10f   : > { %v465_v14 = vrot.slane %v464_v9, 1  ;;  %v501_v15 = vrot.slane %v500_v10, 1 }
 0x110   : > { %v459_v17 = vadd.f32 %v458_v12, %v457_v5  ;;  %v495_v23 = vadd.f32 %v494_v13, %v493_v6 }
 0x111   : > { %v466_v20 = vadd.f32 %v465_v14, %v464_v9  ;;  %v502_v26 = vadd.f32 %v501_v15, %v500_v10 }
 0x112   : > { %v504_v22 = vsel %vm503_vm1, %v441_v16, %v459_v17 }
 0x113   : > { %v507_v24 = vsel %vm506_vm2, %v504_v22, %v477_v18  ;;  %v505_v25 = vsel %vm503_vm1, %v448_v19, %v466_v20 }
 0x114   : > { %v510_v27 = vsel %vm509_vm3, %v507_v24, %v495_v23  ;;  %v508_v28 = vsel %vm506_vm2, %v505_v25, %v484_v21 }
 0x115   : > { %v511_v29 = vsel %vm509_vm3, %v508_v28, %v502_v26 }
 0x116   : > { %v514_v30 = vcombine.low %v510_v27, %v511_v29 }
 0x118   : > { %516 = vst [vmem:[%s201_s24] sm:$0xff] %v514_v30 }
 0x119 PF: > { %s12_s11 = sadd.s32 1, %s697_s11   ;;  %s808_s9 = smov %s693_s10 }
 0x11a   : > { %p9_p5 = scmp.ge.s32.totalorder %s12_s11, 4   ;;  %s809_s10 = smov %s811_s12 }
 0x11c   :  { %11 = sbr.rel (!%p9_p5) target bundleno = 2 (0x2), region = 61 }

</bundles_post_ra>
